<compile_context>
chip_gen: v5e
topology: v5e:2x2
jax: 0.10.0
libtpu: 0.0.40
codegen_flags: <defaults>
</compile_context>

<pallas_src>
import functools

import jax
import jax.numpy as jnp
from jax.experimental import pallas as pl
from jax.experimental.pallas import tpu as pltpu

_NEG = -1e30  # large-negative (finite) mask value; avoids inf-inf NaNs online


def _round_up(x, m):
    return ((x + m - 1) // m) * m


def _clip_loss_kernel(scale_ref, img_ref, txt_ref, out_ref,
                      row_m_ref, row_l_ref, col_m_ref, col_l_ref, acc_ref,
                      *, n_actual, block, needs_mask):
    i = pl.program_id(0)          # row-tile index
    j = pl.program_id(1)          # col-tile index
    ni = pl.num_programs(0)
    nj = pl.num_programs(1)
    t = block

    # ---- init -------------------------------------------------------------
    @pl.when(jnp.logical_and(i == 0, j == 0))
    def _init_acc():
        acc_ref[...] = jnp.zeros((1, 1), jnp.float32)

    @pl.when(j == 0)
    def _init_row_stats():
        row_m_ref[...] = jnp.full((t, 1), _NEG, jnp.float32)
        row_l_ref[...] = jnp.zeros((t, 1), jnp.float32)

    @pl.when(i == 0)
    def _init_col_stats():
        col_m_ref[j] = jnp.full((1, t), _NEG, jnp.float32)
        col_l_ref[j] = jnp.zeros((1, t), jnp.float32)

    # ---- logits tile: scale * img_tile @ txt_tile.T  (f32 accumulation) ----
    scale = scale_ref[0, 0]
    logits = jax.lax.dot_general(
        img_ref[...], txt_ref[...],
        dimension_numbers=(((1,), (1,)), ((), ())),
        preferred_element_type=jnp.float32,
    ) * scale                                                   # (t, t) f32

    if needs_mask:
        g_r = jax.lax.broadcasted_iota(jnp.int32, (t, t), 0) + i * t
        g_c = jax.lax.broadcasted_iota(jnp.int32, (t, t), 1) + j * t
        valid = jnp.logical_and(g_r < n_actual, g_c < n_actual)
        logits = jnp.where(valid, logits, _NEG)

    # ---- diagonal (label) contribution: only diagonal tiles hold it --------
    @pl.when(i == j)
    def _diag():
        lr = jax.lax.broadcasted_iota(jnp.int32, (t, t), 0)
        lc = jax.lax.broadcasted_iota(jnp.int32, (t, t), 1)
        if needs_mask:
            dmask = jnp.logical_and(lr == lc, lr + i * t < n_actual)
        else:
            dmask = lr == lc
        tr = jnp.sum(jnp.where(dmask, logits, 0.0), keepdims=True)   # (1, 1)
        acc_ref[...] += -2.0 * tr

    # ---- online logsumexp over columns (image -> text CE, per row) ---------
    m_old = row_m_ref[...]
    m_new = jnp.maximum(m_old, jnp.max(logits, axis=1, keepdims=True))
    p_r = jnp.exp(logits - m_new)
    row_l_ref[...] = (row_l_ref[...] * jnp.exp(m_old - m_new)
                      + jnp.sum(p_r, axis=1, keepdims=True))
    row_m_ref[...] = m_new

    # ---- online logsumexp over rows (text -> image CE, per column) ---------
    cm_old = col_m_ref[j]
    cm_new = jnp.maximum(cm_old, jnp.max(logits, axis=0, keepdims=True))
    p_c = jnp.exp(logits - cm_new)
    col_l_ref[j] = (col_l_ref[j] * jnp.exp(cm_old - cm_new)
                    + jnp.sum(p_c, axis=0, keepdims=True))
    col_m_ref[j] = cm_new

    # ---- finalize row stats of this row-tile at the last column tile -------
    @pl.when(j == nj - 1)
    def _finish_rows():
        lse_r = row_m_ref[...] + jnp.log(row_l_ref[...])          # (t, 1)
        if needs_mask:
            rr = jax.lax.broadcasted_iota(jnp.int32, (t, 1), 0) + i * t
            lse_r = jnp.where(rr < n_actual, lse_r, 0.0)
        acc_ref[...] += jnp.sum(lse_r, keepdims=True)

    # ---- finalize col stats of this col-tile at the last row tile ----------
    @pl.when(i == ni - 1)
    def _finish_cols():
        lse_c = col_m_ref[j] + jnp.log(col_l_ref[j])              # (1, t)
        if needs_mask:
            cc = jax.lax.broadcasted_iota(jnp.int32, (1, t), 1) + j * t
            lse_c = jnp.where(cc < n_actual, lse_c, 0.0)
        acc_ref[...] += jnp.sum(lse_c, keepdims=True)

    # ---- write the scalar loss on the very last grid step ------------------
    @pl.when(jnp.logical_and(i == ni - 1, j == nj - 1))
    def _write_out():
        out_ref[0, 0] = jnp.sum(acc_ref[...]) / (2.0 * n_actual)


def clip_loss(image_features, text_features, logit_scale, *,
              block_size=256, use_bf16_matmul=True):
    """Pallas implementation of ClipLoss.forward (world_size=1, 2-D inputs)."""
    n, d = image_features.shape
    assert text_features.shape == (n, d)

    in_dtype = jnp.bfloat16 if use_bf16_matmul else jnp.float32
    img = image_features.astype(in_dtype)
    txt = text_features.astype(in_dtype)

    # Square tiles (tm == tn) so the diagonal only intersects i == j tiles.
    t = min(block_size, _round_up(n, 8))
    n_pad = _round_up(n, t)
    needs_mask = n_pad != n
    if needs_mask:
        img = jnp.pad(img, ((0, n_pad - n), (0, 0)))
        txt = jnp.pad(txt, ((0, n_pad - n), (0, 0)))

    ni = n_pad // t
    nj = n_pad // t

    scale = jnp.asarray(logit_scale, jnp.float32).reshape(1, 1)

    kernel = functools.partial(
        _clip_loss_kernel, n_actual=n, block=t, needs_mask=needs_mask)

    # Rough VMEM budget (double-buffered input tiles + scratch + temporaries).
    itemsize = jnp.dtype(in_dtype).itemsize
    lane = 128
    d_pad = _round_up(d, lane)
    t_lane = _round_up(t, lane)
    est = (2 * 2 * t * d_pad * itemsize          # img + txt tiles, 2 buffers each
           + 2 * nj * 8 * t_lane * 4             # column max/sumexp scratch
           + 2 * t * lane * 4                    # row max/sumexp scratch
           + 8 * t * t_lane * 4)                 # f32 tile temporaries
    vmem_limit = int(min(max(2 * est, 32 * 1024 * 1024), 64 * 1024 * 1024))

    grid_spec = pltpu.PrefetchScalarGridSpec(
        num_scalar_prefetch=0,
        grid=(ni, nj),
        in_specs=[
            pl.BlockSpec(memory_space=pltpu.SMEM),        # logit_scale (1, 1)
            pl.BlockSpec((t, d), lambda i, j: (i, 0)),    # image rows tile
            pl.BlockSpec((t, d), lambda i, j: (j, 0)),    # text rows tile
        ],
        out_specs=pl.BlockSpec(memory_space=pltpu.SMEM),  # scalar loss
        scratch_shapes=[
            pltpu.VMEM((t, 1), jnp.float32),              # row running max
            pltpu.VMEM((t, 1), jnp.float32),              # row running sumexp
            pltpu.VMEM((nj, 1, t), jnp.float32),          # col running max
            pltpu.VMEM((nj, 1, t), jnp.float32),          # col running sumexp
            pltpu.VMEM((1, 1), jnp.float32),              # loss accumulator
        ],
    )

    out = pl.pallas_call(
        kernel,
        out_shape=jax.ShapeDtypeStruct((1, 1), jnp.float32),
        grid_spec=grid_spec,
        compiler_params=pltpu.CompilerParams(
            # Both grid axes carry reductions (row stats over j, col stats
            # over i), so neither is safely "parallel" with shared scratch.
            dimension_semantics=("arbitrary", "arbitrary"),
            vmem_limit_bytes=vmem_limit,
        ),
    )(scale, img, txt)
    return out[0, 0]


def _reference_clip_loss(image_features, text_features, logit_scale):
    """Pure-JAX reference mirroring the PyTorch module (world_size=1, 2-D)."""
    logits_i = logit_scale * jnp.dot(image_features, text_features.T,
                                     preferred_element_type=jnp.float32)
    logits_t = logit_scale * jnp.dot(text_features, image_features.T,
                                     preferred_element_type=jnp.float32)
    labels = jnp.arange(logits_i.shape[0])

    def ce(logits):
        logits = logits.astype(jnp.float32)
        lse = jax.scipy.special.logsumexp(logits, axis=1)
        picked = jnp.take_along_axis(logits, labels[:, None], axis=1)[:, 0]
        return jnp.mean(lse - picked)

    return (ce(logits_i) + ce(logits_t)) / 2.0


if __name__ == "__main__":
    key = jax.random.PRNGKey(0)
    k1, k2, k3, k4 = jax.random.split(key, 4)

    # Deterministic "parameter": logit_scale = exp(log(1/0.07)) as in CLIP init.
    logit_scale = jnp.exp(jnp.log(jnp.float32(1.0 / 0.07)))

    # Case 1: small single-tile path (N=8, D=32), features L2-normalized.
    N, D = 8, 32
    img = jax.random.normal(k1, (N, D), jnp.float32)
    txt = jax.random.normal(k2, (N, D), jnp.float32)
    img = img / jnp.linalg.norm(img, axis=-1, keepdims=True)
    txt = txt / jnp.linalg.norm(txt, axis=-1, keepdims=True)

    loss = clip_loss(img, txt, logit_scale)
    jax.block_until_ready(loss)

    ref_bf16 = _reference_clip_loss(img.astype(jnp.bfloat16),
                                    txt.astype(jnp.bfloat16), logit_scale)
    ref_f32 = _reference_clip_loss(img, txt, logit_scale)
    assert jnp.allclose(loss, ref_bf16, rtol=1e-4, atol=1e-4), (loss, ref_bf16)
    assert jnp.allclose(loss, ref_f32, rtol=5e-2, atol=5e-2), (loss, ref_f32)

    # Case 2: multi-tile grid + padding/masking path (N not a tile multiple).
    N2, D2 = 20, 32
    img2 = jax.random.normal(k3, (N2, D2), jnp.float32)
    txt2 = jax.random.normal(k4, (N2, D2), jnp.float32)
    img2 = img2 / jnp.linalg.norm(img2, axis=-1, keepdims=True)
    txt2 = txt2 / jnp.linalg.norm(txt2, axis=-1, keepdims=True)

    loss2 = clip_loss(img2, txt2, logit_scale, block_size=8)
    jax.block_until_ready(loss2)

    ref2 = _reference_clip_loss(img2.astype(jnp.bfloat16),
                                txt2.astype(jnp.bfloat16), logit_scale)
    assert jnp.allclose(loss2, ref2, rtol=1e-4, atol=1e-4), (loss2, ref2)

    print("KERNEL_OK")
</pallas_src>

<mosaic_0001>
module attributes {stable_mosaic.version = 11 : i64} {
  func.func @_clip_loss_kernel(%arg0: i32, %arg1: i32, %arg2: memref<1x1xf32, #tpu.memory_space<smem>>, %arg3: memref<8x32xbf16, #tpu.memory_space<vmem>>, %arg4: memref<8x32xbf16, #tpu.memory_space<vmem>>, %arg5: memref<1x1xf32, #tpu.memory_space<smem>>, %arg6: memref<8x1xf32, #tpu.memory_space<vmem>>, %arg7: memref<8x1xf32, #tpu.memory_space<vmem>>, %arg8: memref<1x1x8xf32, #tpu.memory_space<vmem>>, %arg9: memref<1x1x8xf32, #tpu.memory_space<vmem>>, %arg10: memref<1x1xf32, #tpu.memory_space<vmem>>) attributes {dimension_semantics = [#tpu.dimension_semantics<arbitrary>, #tpu.dimension_semantics<arbitrary>], iteration_bounds = array<i64: 1, 1>, scalar_prefetch = 0 : i64, scratch_operands = 5 : i64, tpu.core_type = #tpu.core_type<tc>, window_params = [{transform_indices = @transform_0, window_bounds = array<i64: 1, 1>}, {transform_indices = @transform_1, window_bounds = array<i64: 8, 32>}, {transform_indices = @transform_2, window_bounds = array<i64: 8, 32>}, {transform_indices = @transform_3, window_bounds = array<i64: 1, 1>}]} {
    %c0_i32 = arith.constant 0 : i32
    %0 = arith.cmpi eq, %arg0, %c0_i32 : i32
    %c0_i32_0 = arith.constant 0 : i32
    %1 = arith.cmpi eq, %arg1, %c0_i32_0 : i32
    %2 = arith.andi %0, %1 : i1
    %3 = arith.extui %2 : i1 to i32
    %c0_i32_1 = arith.constant 0 : i32
    %4 = arith.cmpi ne, %3, %c0_i32_1 : i32
    scf.if %4 {
      %cst_39 = arith.constant 0.000000e+00 : f32
      %73 = vector.broadcast %cst_39 : f32 to vector<1x1xf32>
      %c0_40 = arith.constant 0 : index
      %c0_41 = arith.constant 0 : index
      %74 = vector.load %arg10[%c0_40, %c0_41] : memref<1x1xf32, #tpu.memory_space<vmem>>, vector<1x1xf32>
      tpu.vector_store %arg10[%c0_40, %c0_41], %73 {strides = array<i32>} : memref<1x1xf32, #tpu.memory_space<vmem>>, vector<1x1xf32>,
    } else {
    }
    %c0_i32_2 = arith.constant 0 : i32
    %5 = arith.cmpi eq, %arg1, %c0_i32_2 : i32
    %6 = arith.extui %5 : i1 to i32
    %c0_i32_3 = arith.constant 0 : i32
    %7 = arith.cmpi ne, %6, %c0_i32_3 : i32
    scf.if %7 {
      %cst_39 = arith.constant -1.000000e+30 : f32
      %73 = vector.broadcast %cst_39 : f32 to vector<8x1xf32>
      %c0_40 = arith.constant 0 : index
      %c0_41 = arith.constant 0 : index
      %74 = vector.load %arg6[%c0_40, %c0_41] : memref<8x1xf32, #tpu.memory_space<vmem>>, vector<8x1xf32>
      tpu.vector_store %arg6[%c0_40, %c0_41], %73 {strides = array<i32>} : memref<8x1xf32, #tpu.memory_space<vmem>>, vector<8x1xf32>,
      %cst_42 = arith.constant 0.000000e+00 : f32
      %75 = vector.broadcast %cst_42 : f32 to vector<8x1xf32>
      %c0_43 = arith.constant 0 : index
      %c0_44 = arith.constant 0 : index
      %76 = vector.load %arg7[%c0_43, %c0_44] : memref<8x1xf32, #tpu.memory_space<vmem>>, vector<8x1xf32>
      tpu.vector_store %arg7[%c0_43, %c0_44], %75 {strides = array<i32>} : memref<8x1xf32, #tpu.memory_space<vmem>>, vector<8x1xf32>,
    } else {
    }
    %c0_i32_4 = arith.constant 0 : i32
    %8 = arith.cmpi eq, %arg0, %c0_i32_4 : i32
    %9 = arith.extui %8 : i1 to i32
    %c0_i32_5 = arith.constant 0 : i32
    %10 = arith.cmpi ne, %9, %c0_i32_5 : i32
    scf.if %10 {
      %cst_39 = arith.constant -1.000000e+30 : f32
      %73 = vector.broadcast %cst_39 : f32 to vector<1x8xf32>
      %74 = arith.index_cast %arg1 : i32 to index
      %c0_40 = arith.constant 0 : index
      %c0_41 = arith.constant 0 : index
      %75 = vector.load %arg8[%74, %c0_40, %c0_41] : memref<1x1x8xf32, #tpu.memory_space<vmem>>, vector<1x1x8xf32>
      %76 = vector.shape_cast %75 : vector<1x1x8xf32> to vector<1x8xf32>
      %77 = vector.shape_cast %73 : vector<1x8xf32> to vector<1x1x8xf32>
      tpu.vector_store %arg8[%74, %c0_40, %c0_41], %77 {strides = array<i32>} : memref<1x1x8xf32, #tpu.memory_space<vmem>>, vector<1x1x8xf32>,
      %cst_42 = arith.constant 0.000000e+00 : f32
      %78 = vector.broadcast %cst_42 : f32 to vector<1x8xf32>
      %79 = arith.index_cast %arg1 : i32 to index
      %c0_43 = arith.constant 0 : index
      %c0_44 = arith.constant 0 : index
      %80 = vector.load %arg9[%79, %c0_43, %c0_44] : memref<1x1x8xf32, #tpu.memory_space<vmem>>, vector<1x1x8xf32>
      %81 = vector.shape_cast %80 : vector<1x1x8xf32> to vector<1x8xf32>
      %82 = vector.shape_cast %78 : vector<1x8xf32> to vector<1x1x8xf32>
      tpu.vector_store %arg9[%79, %c0_43, %c0_44], %82 {strides = array<i32>} : memref<1x1x8xf32, #tpu.memory_space<vmem>>, vector<1x1x8xf32>,
    } else {
    }
    %c0 = arith.constant 0 : index
    %c0_6 = arith.constant 0 : index
    %11 = memref.load %arg2[%c0, %c0_6] : memref<1x1xf32, #tpu.memory_space<smem>>
    %c0_7 = arith.constant 0 : index
    %c0_8 = arith.constant 0 : index
    %12 = vector.load %arg3[%c0_7, %c0_8] : memref<8x32xbf16, #tpu.memory_space<vmem>>, vector<8x32xbf16>
    %c0_9 = arith.constant 0 : index
    %c0_10 = arith.constant 0 : index
    %13 = vector.load %arg4[%c0_9, %c0_10] : memref<8x32xbf16, #tpu.memory_space<vmem>>, vector<8x32xbf16>
    %cst = arith.constant dense<0.000000e+00> : vector<8x8xf32>
    %14 = tpu.matmul %12, %13, %cst {dimension_numbers = #tpu.dot_dimension_numbers<[1], [1], [0], [0], [0, 0, 1, 0], [], []>} : vector<8x32xbf16>, vector<8x32xbf16>, vector<8x8xf32> -> vector<8x8xf32>
    %15 = vector.broadcast %11 : f32 to vector<8x8xf32>
    %16 = arith.mulf %14, %15 : vector<8x8xf32>
    %17 = arith.cmpi eq, %arg0, %arg1 : i32
    %18 = arith.extui %17 : i1 to i32
    %c0_i32_11 = arith.constant 0 : i32
    %19 = arith.cmpi ne, %18, %c0_i32_11 : i32
    scf.if %19 {
      %73 = tpu.iota {dimensions = array<i32: 0>} : vector<8x8xi32>
      %74 = tpu.iota {dimensions = array<i32: 1>} : vector<8x8xi32>
      %75 = arith.cmpi eq, %73, %74 : vector<8x8xi32>
      %cst_39 = arith.constant 0.000000e+00 : f32
      %76 = vector.broadcast %cst_39 : f32 to vector<8x8xf32>
      %77 = arith.select %75, %16, %76 : vector<8x8xi1>, vector<8x8xf32>
      %78 = vector.shape_cast %77 : vector<8x8xf32> to vector<1x8x8xf32>
      %cst_40 = arith.constant dense<0.000000e+00> : vector<1xf32>
      %79 = vector.multi_reduction <add>, %78, %cst_40 [1, 2] : vector<1x8x8xf32> to vector<1xf32>
      %80 = vector.shape_cast %79 : vector<1xf32> to vector<1x1x1xf32>
      %81 = vector.extract %80[0, 0, 0] : f32 from vector<1x1x1xf32>
      %82 = vector.broadcast %81 : f32 to vector<1x1xf32>
      %c0_41 = arith.constant 0 : index
      %c0_42 = arith.constant 0 : index
      %83 = vector.load %arg10[%c0_41, %c0_42] : memref<1x1xf32, #tpu.memory_space<vmem>>, vector<1x1xf32>
      %cst_43 = arith.constant -2.000000e+00 : f32
      %84 = vector.broadcast %cst_43 : f32 to vector<1x1xf32>
      %85 = arith.mulf %84, %82 : vector<1x1xf32>
      %86 = arith.addf %83, %85 : vector<1x1xf32>
      %c0_44 = arith.constant 0 : index
      %c0_45 = arith.constant 0 : index
      %87 = vector.load %arg10[%c0_44, %c0_45] : memref<1x1xf32, #tpu.memory_space<vmem>>, vector<1x1xf32>
      tpu.vector_store %arg10[%c0_44, %c0_45], %86 {strides = array<i32>} : memref<1x1xf32, #tpu.memory_space<vmem>>, vector<1x1xf32>,
    } else {
    }
    %c0_12 = arith.constant 0 : index
    %c0_13 = arith.constant 0 : index
    %20 = vector.load %arg6[%c0_12, %c0_13] : memref<8x1xf32, #tpu.memory_space<vmem>>, vector<8x1xf32>
    %cst_14 = arith.constant dense<0xFF800000> : vector<8xf32>
    %21 = vector.multi_reduction <maximumf>, %16, %cst_14 [1] : vector<8x8xf32> to vector<8xf32>
    %22 = vector.shape_cast %21 : vector<8xf32> to vector<8x1xf32>
    %23 = arith.maximumf %20, %22 : vector<8x1xf32>
    %24 = vector.broadcast %23 : vector<8x1xf32> to vector<8x8xf32>
    %25 = arith.subf %16, %24 : vector<8x8xf32>
    %26 = math.exp %25 : vector<8x8xf32>
    %c0_15 = arith.constant 0 : index
    %c0_16 = arith.constant 0 : index
    %27 = vector.load %arg7[%c0_15, %c0_16] : memref<8x1xf32, #tpu.memory_space<vmem>>, vector<8x1xf32>
    %28 = arith.subf %20, %23 : vector<8x1xf32>
    %29 = math.exp %28 : vector<8x1xf32>
    %30 = arith.mulf %27, %29 : vector<8x1xf32>
    %cst_17 = arith.constant dense<0.000000e+00> : vector<8xf32>
    %31 = vector.multi_reduction <add>, %26, %cst_17 [1] : vector<8x8xf32> to vector<8xf32>
    %32 = vector.shape_cast %31 : vector<8xf32> to vector<8x1xf32>
    %33 = arith.addf %30, %32 : vector<8x1xf32>
    %c0_18 = arith.constant 0 : index
    %c0_19 = arith.constant 0 : index
    %34 = vector.load %arg7[%c0_18, %c0_19] : memref<8x1xf32, #tpu.memory_space<vmem>>, vector<8x1xf32>
    tpu.vector_store %arg7[%c0_18, %c0_19], %33 {strides = array<i32>} : memref<8x1xf32, #tpu.memory_space<vmem>>, vector<8x1xf32>,
    %c0_20 = arith.constant 0 : index
    %c0_21 = arith.constant 0 : index
    %35 = vector.load %arg6[%c0_20, %c0_21] : memref<8x1xf32, #tpu.memory_space<vmem>>, vector<8x1xf32>
    tpu.vector_store %arg6[%c0_20, %c0_21], %23 {strides = array<i32>} : memref<8x1xf32, #tpu.memory_space<vmem>>, vector<8x1xf32>,
    %36 = arith.index_cast %arg1 : i32 to index
    %c0_22 = arith.constant 0 : index
    %c0_23 = arith.constant 0 : index
    %37 = vector.load %arg8[%36, %c0_22, %c0_23] : memref<1x1x8xf32, #tpu.memory_space<vmem>>, vector<1x1x8xf32>
    %38 = vector.shape_cast %37 : vector<1x1x8xf32> to vector<1x8xf32>
    %cst_24 = arith.constant dense<0xFF800000> : vector<8xf32>
    %39 = vector.multi_reduction <maximumf>, %16, %cst_24 [0] : vector<8x8xf32> to vector<8xf32>
    %40 = vector.shape_cast %39 : vector<8xf32> to vector<1x8xf32>
    %41 = arith.maximumf %38, %40 : vector<1x8xf32>
    %42 = vector.broadcast %41 : vector<1x8xf32> to vector<8x8xf32>
    %43 = arith.subf %16, %42 : vector<8x8xf32>
    %44 = math.exp %43 : vector<8x8xf32>
    %45 = arith.index_cast %arg1 : i32 to index
    %c0_25 = arith.constant 0 : index
    %c0_26 = arith.constant 0 : index
    %46 = vector.load %arg9[%45, %c0_25, %c0_26] : memref<1x1x8xf32, #tpu.memory_space<vmem>>, vector<1x1x8xf32>
    %47 = vector.shape_cast %46 : vector<1x1x8xf32> to vector<1x8xf32>
    %48 = arith.subf %38, %41 : vector<1x8xf32>
    %49 = math.exp %48 : vector<1x8xf32>
    %50 = arith.mulf %47, %49 : vector<1x8xf32>
    %cst_27 = arith.constant dense<0.000000e+00> : vector<8xf32>
    %51 = vector.multi_reduction <add>, %44, %cst_27 [0] : vector<8x8xf32> to vector<8xf32>
    %52 = vector.shape_cast %51 : vector<8xf32> to vector<1x8xf32>
    %53 = arith.addf %50, %52 : vector<1x8xf32>
    %54 = arith.index_cast %arg1 : i32 to index
    %c0_28 = arith.constant 0 : index
    %c0_29 = arith.constant 0 : index
    %55 = vector.load %arg9[%54, %c0_28, %c0_29] : memref<1x1x8xf32, #tpu.memory_space<vmem>>, vector<1x1x8xf32>
    %56 = vector.shape_cast %55 : vector<1x1x8xf32> to vector<1x8xf32>
    %57 = vector.shape_cast %53 : vector<1x8xf32> to vector<1x1x8xf32>
    tpu.vector_store %arg9[%54, %c0_28, %c0_29], %57 {strides = array<i32>} : memref<1x1x8xf32, #tpu.memory_space<vmem>>, vector<1x1x8xf32>,
    %58 = arith.index_cast %arg1 : i32 to index
    %c0_30 = arith.constant 0 : index
    %c0_31 = arith.constant 0 : index
    %59 = vector.load %arg8[%58, %c0_30, %c0_31] : memref<1x1x8xf32, #tpu.memory_space<vmem>>, vector<1x1x8xf32>
    %60 = vector.shape_cast %59 : vector<1x1x8xf32> to vector<1x8xf32>
    %61 = vector.shape_cast %41 : vector<1x8xf32> to vector<1x1x8xf32>
    tpu.vector_store %arg8[%58, %c0_30, %c0_31], %61 {strides = array<i32>} : memref<1x1x8xf32, #tpu.memory_space<vmem>>, vector<1x1x8xf32>,
    %c0_i32_32 = arith.constant 0 : i32
    %62 = arith.cmpi eq, %arg1, %c0_i32_32 : i32
    %63 = arith.extui %62 : i1 to i32
    %c0_i32_33 = arith.constant 0 : i32
    %64 = arith.cmpi ne, %63, %c0_i32_33 : i32
    scf.if %64 {
      %c0_39 = arith.constant 0 : index
      %c0_40 = arith.constant 0 : index
      %73 = vector.load %arg6[%c0_39, %c0_40] : memref<8x1xf32, #tpu.memory_space<vmem>>, vector<8x1xf32>
      %c0_41 = arith.constant 0 : index
      %c0_42 = arith.constant 0 : index
      %74 = vector.load %arg7[%c0_41, %c0_42] : memref<8x1xf32, #tpu.memory_space<vmem>>, vector<8x1xf32>
      %75 = math.log %74 : vector<8x1xf32>
      %76 = arith.addf %73, %75 : vector<8x1xf32>
      %c0_43 = arith.constant 0 : index
      %c0_44 = arith.constant 0 : index
      %77 = vector.load %arg10[%c0_43, %c0_44] : memref<1x1xf32, #tpu.memory_space<vmem>>, vector<1x1xf32>
      %78 = vector.shape_cast %76 : vector<8x1xf32> to vector<1x8x1xf32>
      %cst_45 = arith.constant dense<0.000000e+00> : vector<1xf32>
      %79 = vector.multi_reduction <add>, %78, %cst_45 [1, 2] : vector<1x8x1xf32> to vector<1xf32>
      %80 = vector.shape_cast %79 : vector<1xf32> to vector<1x1x1xf32>
      %81 = vector.extract %80[0, 0, 0] : f32 from vector<1x1x1xf32>
      %82 = vector.broadcast %81 : f32 to vector<1x1xf32>
      %83 = arith.addf %77, %82 : vector<1x1xf32>
      %c0_46 = arith.constant 0 : index
      %c0_47 = arith.constant 0 : index
      %84 = vector.load %arg10[%c0_46, %c0_47] : memref<1x1xf32, #tpu.memory_space<vmem>>, vector<1x1xf32>
      tpu.vector_store %arg10[%c0_46, %c0_47], %83 {strides = array<i32>} : memref<1x1xf32, #tpu.memory_space<vmem>>, vector<1x1xf32>,
    } else {
    }
    %c0_i32_34 = arith.constant 0 : i32
    %65 = arith.cmpi eq, %arg0, %c0_i32_34 : i32
    %66 = arith.extui %65 : i1 to i32
    %c0_i32_35 = arith.constant 0 : i32
    %67 = arith.cmpi ne, %66, %c0_i32_35 : i32
    scf.if %67 {
      %73 = arith.index_cast %arg1 : i32 to index
      %c0_39 = arith.constant 0 : index
      %c0_40 = arith.constant 0 : index
      %74 = vector.load %arg8[%73, %c0_39, %c0_40] : memref<1x1x8xf32, #tpu.memory_space<vmem>>, vector<1x1x8xf32>
      %75 = vector.shape_cast %74 : vector<1x1x8xf32> to vector<1x8xf32>
      %76 = arith.index_cast %arg1 : i32 to index
      %c0_41 = arith.constant 0 : index
      %c0_42 = arith.constant 0 : index
      %77 = vector.load %arg9[%76, %c0_41, %c0_42] : memref<1x1x8xf32, #tpu.memory_space<vmem>>, vector<1x1x8xf32>
      %78 = vector.shape_cast %77 : vector<1x1x8xf32> to vector<1x8xf32>
      %79 = math.log %78 : vector<1x8xf32>
      %80 = arith.addf %75, %79 : vector<1x8xf32>
      %c0_43 = arith.constant 0 : index
      %c0_44 = arith.constant 0 : index
      %81 = vector.load %arg10[%c0_43, %c0_44] : memref<1x1xf32, #tpu.memory_space<vmem>>, vector<1x1xf32>
      %82 = vector.shape_cast %80 : vector<1x8xf32> to vector<1x1x8xf32>
      %cst_45 = arith.constant dense<0.000000e+00> : vector<1xf32>
      %83 = vector.multi_reduction <add>, %82, %cst_45 [1, 2] : vector<1x1x8xf32> to vector<1xf32>
      %84 = vector.shape_cast %83 : vector<1xf32> to vector<1x1x1xf32>
      %85 = vector.extract %84[0, 0, 0] : f32 from vector<1x1x1xf32>
      %86 = vector.broadcast %85 : f32 to vector<1x1xf32>
      %87 = arith.addf %81, %86 : vector<1x1xf32>
      %c0_46 = arith.constant 0 : index
      %c0_47 = arith.constant 0 : index
      %88 = vector.load %arg10[%c0_46, %c0_47] : memref<1x1xf32, #tpu.memory_space<vmem>>, vector<1x1xf32>
      tpu.vector_store %arg10[%c0_46, %c0_47], %87 {strides = array<i32>} : memref<1x1xf32, #tpu.memory_space<vmem>>, vector<1x1xf32>,
    } else {
    }
    %c0_i32_36 = arith.constant 0 : i32
    %68 = arith.cmpi eq, %arg0, %c0_i32_36 : i32
    %c0_i32_37 = arith.constant 0 : i32
    %69 = arith.cmpi eq, %arg1, %c0_i32_37 : i32
    %70 = arith.andi %68, %69 : i1
    %71 = arith.extui %70 : i1 to i32
    %c0_i32_38 = arith.constant 0 : i32
    %72 = arith.cmpi ne, %71, %c0_i32_38 : i32
    scf.if %72 {
      %c0_39 = arith.constant 0 : index
      %c0_40 = arith.constant 0 : index
      %73 = vector.load %arg10[%c0_39, %c0_40] : memref<1x1xf32, #tpu.memory_space<vmem>>, vector<1x1xf32>
      %74 = vector.shape_cast %73 : vector<1x1xf32> to vector<1x1x1xf32>
      %cst_41 = arith.constant dense<0.000000e+00> : vector<1xf32>
      %75 = vector.multi_reduction <add>, %74, %cst_41 [1, 2] : vector<1x1x1xf32> to vector<1xf32>
      %76 = vector.shape_cast %75 : vector<1xf32> to vector<1x1x1xf32>
      %77 = vector.extract %76[0, 0, 0] : f32 from vector<1x1x1xf32>
      %cst_42 = arith.constant 1.600000e+01 : f32
      %78 = arith.divf %77, %cst_42 : f32
      %c0_43 = arith.constant 0 : index
      %c0_44 = arith.constant 0 : index
      %79 = memref.load %arg5[%c0_43, %c0_44] : memref<1x1xf32, #tpu.memory_space<smem>>
      memref.store %78, %arg5[%c0_43, %c0_44] : memref<1x1xf32, #tpu.memory_space<smem>>
    } else {
    }
    return
  }
  func.func @transform_0(%arg0: i32, %arg1: i32) -> (i32, i32) {
    %c0_i32 = arith.constant 0 : i32
    %c0_i32_0 = arith.constant 0 : i32
    %c0_i32_1 = arith.constant 0 : i32
    return %c0_i32, %c0_i32_0 : i32, i32
  }
  func.func @transform_1(%arg0: i32, %arg1: i32) -> (i32, i32) {
    %c0_i32 = arith.constant 0 : i32
    %c0_i32_0 = arith.constant 0 : i32
    return %arg0, %c0_i32 : i32, i32
  }
  func.func @transform_2(%arg0: i32, %arg1: i32) -> (i32, i32) {
    %c0_i32 = arith.constant 0 : i32
    %c0_i32_0 = arith.constant 0 : i32
    return %arg1, %c0_i32 : i32, i32
  }
  func.func @transform_3(%arg0: i32, %arg1: i32) -> (i32, i32) {
    %c0_i32 = arith.constant 0 : i32
    %c0_i32_0 = arith.constant 0 : i32
    %c0_i32_1 = arith.constant 0 : i32
    return %c0_i32, %c0_i32_0 : i32, i32
  }
}

</mosaic_0001>

<bundles_post_ra>
// kernel: tpu_custom_call.1
= control target key start
LH: loop header
LB: loop body
LE: loop exit
PB: predicated region body
PF: predicated region fallthrough
CT: control target
= control target key end

     0   :  { %9 = vsyncpa [#allocation9], 0  ;;  %s411_s0 = inlined_call_operand.<no memory space> [shape: f32[1,1], index: 0, kind: input, shape index: {}]   ;;  %s412_s1 = inlined_call_operand.hbm [shape: bf16[8,32], index: 1, kind: input, shape index: {}]   ;;  %s413_s2 = inlined_call_operand.hbm [shape: bf16[8,32], index: 2, kind: input, shape index: {}]   ;;  %s414_s3 = inlined_call_operand.hbm [shape: f32[1,1], index: 3, kind: output, shape index: {}]  }
   0x1   :  { %10 = vsyncpa [#allocation12], 0 }
   0x2   :  { %11 = vsyncpa [#allocation10], 0  ;;  %s19_s14 = sshll.u32 %s412_s1, 4  ;;  %s351_s15 = smov [#allocation8]   ;;  %s20_s14 = int_to_ptr.hbm [resolvable:$true] %s19_s14 }
   0x3   :  { %s21_s16 = sshll.u32 %s351_s15, 4  ;;  %s30_s19 = sshll.u32 %s413_s2, 4  ;;  %s22_s16 = int_to_ptr.vmem [resolvable:$true] %s21_s16  ;;  %s31_s19 = int_to_ptr.hbm [resolvable:$true] %s30_s19 }
   0x4   :  { %24 = dma.hbm_to_vmem [thread:$0]  %s20_s14, 64, %s22_s16, [#allocation9]  }
   0x5   :  { %s352_s20 = smov [#allocation11]  }
   0x6   :  { %s32_s21 = sshll.u32 %s352_s20, 4  ;;  %s33_s21 = int_to_ptr.vmem [resolvable:$true] %s32_s21 }
   0x7   :  { %35 = dma.hbm_to_vmem [thread:$0]  %s31_s19, 64, %s33_s21, [#allocation12]  }
   0x8   :  { %345 = dma.done.wait [#allocation9], 64  }
   0x9   :  { %346 = vsyncadd [#allocation9], 4294967232 }
   0xa   :  { %347 = dma.done.wait [#allocation12], 64  }
   0xb   :  { %348 = vsyncadd [#allocation12], 4294967232  ;;  %vm68_vm0 = vcmask 261120   ;;  %v67_v0 = vld [vmem:[#allocation11] sm:$0xf]  ;;  %vm62_vm1 = vcmask 57344   ;;  %v88_v5 = vstv %s411_s0  ;;  %v94_v43 = vlaneseq }
   0xc   :  { %v73_v1 = vsel %vm68_vm0, %v67_v0, 0  ;;  %v66_v2 = vld [vmem:[#allocation8] sm:$0xf]  ;;  %v353_v3 = vmov -1e+30   ;;  %vm56_vm2 = vcmask 7168  }
   0xd   :  { %82 = vmatpush.bf16.xpose.msra.mxu0 %v73_v1  ;;  %63 = vst.msk [vmem:[#allocation4] sm:$0x1] %vm62_vm1, %v353_v3  ;;  %v354_v4 = vmov 0.0   ;;  %vm100_vm3 = vcmask 64512   ;;  %v355_v35 = vmov 0   ;;  %v95_v44 = vshrl.u32 %v94_v43, 7 }
   0xe   :  { %57 = vst.msk [vmem:[#allocation2] sm:$0xff] %vm56_vm2, %v353_v3  ;;  %270 = vset.pattern.permute.xlu0 %v355_v35  ;;  %v97_v45 = vand.u32 127, %v94_v43  ;;  %vm51_vm5 = vcmask 0   ;;  %s240_s26 = sshll.u32 %s414_s3, 4  ;;  %s357_s30 = smov [#allocation13]   ;;  %s241_s26 = int_to_ptr.hbm [resolvable:$true] %s240_s26 }
   0xf   :  { %58 = vst.msk [vmem:[#allocation3] sm:$0xff] %vm56_vm2, %v354_v4 }
  0x10   :  { %64 = vst.msk [vmem:[#allocation5] sm:$0x1] %vm62_vm1, %v354_v4  ;;  %vm98_vm4 = vcmp.eq.s32.totalorder %v95_v44, %v97_v45 }
  0x11   :  { %52 = vst.msk [vmem:[#allocation6] sm:$0x1] %vm51_vm5, %v354_v4 }
  0x14   :  { %252 = vmatmul.msk.bf16.vlgmr.msra.gmra.mxu0 %vm68_vm0, %v66_v2  ;;  %v143_v15 = vld [vmem:[#allocation4] sm:$0x1] }
  0x15   :  { %v117_v36 = vld [vmem:[#allocation2] sm:$0xff] }
  0x16   :  { %v131_v52 = vld [vmem:[#allocation3] sm:$0xff] }
  0x17   :  { %v157_v30 = vld [vmem:[#allocation5] sm:$0x1] }
  0x91   :  { %v84_v6 = vpop.f32.mrf.mxu0 }
  0x92   :  { %v89_v7 = vmul.f32 %v88_v5, %v84_v6 }
  0x94   :  { %v119_v8 = vsel %vm100_vm3, %v89_v7, -inf  ;;  %v99_v48 = vsel %vm98_vm4, %v89_v7, 0.0 }
  0x95   :  { %120 = vmax.xlane.f32.xlu0 %v119_v8  ;;  %v144_v9 = vrot.slane %v119_v8, 4  ;;  %v101_v49 = vsel %vm100_vm3, %v99_v48, 0.0 }
  0x97   :  { %v145_v10 = vmax.f32 %v119_v8, %v144_v9 }
  0x99   :  { %v146_v11 = vrot.slane %v145_v10, 2  ;;  %v86_v12 = vpop.f32.mrf.mxu0 }
  0x9a   :  { %v112_v12 = vld [vmem:[#allocation6] sm:$0x1] }
  0x9b   :  { %v147_v13 = vmax.f32 %v145_v10, %v146_v11 }
  0x9d   :  { %v148_v14 = vrot.slane %v147_v13, 1 }
  0x9f   :  { %v149_v16 = vmax.f32 %v147_v13, %v148_v14 }
  0xa1   :  { %v150_v17 = vmax.f32 %v143_v15, %v149_v16 }
  0xa3   :  { %v152_v18 = vperm.slane %v150_v17, 0  ;;  %172 = vst.msk [vmem:[#allocation4] sm:$0x1] %vm62_vm1, %v150_v17  ;;  %v158_v21 = vsub.f32 %v143_v15, %v150_v17 }
  0xa5   :  { %v154_v19 = vsub.f32 %v89_v7, %v152_v18  ;;  %v159_v22 = vmul.f32 1.442695, %v158_v21 }
  0xa7   :  { %v155_v20 = vmul.f32 1.442695, %v154_v19 }
  0xa9   :  { %271 = vpow2.f32 %v155_v20 }
  0xaa   :  { %273 = vpow2.f32 %v159_v22  ;;  %v199_v8 = vld [vmem:[#allocation4] sm:$0x1] }
  0xaf   :  { %v272_v23 = vpop.eup %271 }
  0xb0   :  { %v162_v24 = vsel %vm100_vm3, %v272_v23, 0.0  ;;  %v274_v29 = vpop.eup %273 }
  0xb1   :  { %v163_v25 = vrot.slane %v162_v24, 4  ;;  %v161_v32 = vmul.f32 %v274_v29, %v157_v30  ;;  %v356_v29 = vmov 16.0  }
  0xb3   :  { %v164_v26 = vadd.f32 %v163_v25, %v162_v24 }
  0xb5   :  { %v165_v27 = vrot.slane %v164_v26, 2 }
  0xb7   :  { %v166_v28 = vadd.f32 %v165_v27, %v164_v26 }
  0xb9   :  { %v167_v31 = vrot.slane %v166_v28, 1 }
  0xbb   :  { %v168_v33 = vadd.f32 %v167_v31, %v166_v28 }
  0xbd   :  { %v169_v34 = vadd.f32 %v168_v33, %v161_v32 }
  0xbf   :  { %171 = vst.msk [vmem:[#allocation5] sm:$0x1] %vm62_vm1, %v169_v34 }
  0xc6   :  { %v200_v59 = vld [vmem:[#allocation5] sm:$0x1] }
 0x108   :  { %v121_v37 = vpop.xlane.xlu0 %120 }
 0x109   :  { %v122_v38 = vmax.f32 %v117_v36, %v121_v37 }
 0x10b   :  { %v132_v39 = vsub.f32 %v117_v36, %v122_v38  ;;  %142 = vst.msk [vmem:[#allocation2] sm:$0xff] %vm56_vm2, %v122_v38  ;;  %125 = vperm.xlu0 %270, %v122_v38  }
 0x10d   :  { %v133_v50 = vmul.f32 1.442695, %v132_v39 }
 0x112   :  { %v176_v5 = vld [vmem:[#allocation2] sm:$0xff] }
 0x17d   :  { %v126_v40 = vpop.permute.xlu0 %125 }
 0x17e   :  { %v128_v41 = vsub.f32 %v89_v7, %v126_v40 }
 0x180   :  { %v129_v42 = vmul.f32 1.442695, %v128_v41 }
 0x182   :  { %275 = vpow2.f32 %v129_v42 }
 0x183   :  { %277 = vpow2.f32 %v133_v50 }
 0x188   :  { %v276_v46 = vpop.eup %275 }
 0x189   :  { %v136_v47 = vsel %vm100_vm3, %v276_v46, 0.0  ;;  %v278_v51 = vpop.eup %277 }
 0x18a   :  { %137 = vadd.xlane.f32.xlu1 %v136_v47  ;;  %v135_v53 = vmul.f32 %v278_v51, %v131_v52 }
 0x192   :  { %102 = vadd.xlane.f32.xlu1 %v101_v49 }
 0x1fd   :  { %v138_v54 = vpop.xlane.xlu1 %137 }
 0x1fe   :  { %v139_v55 = vadd.f32 %v138_v54, %v135_v53 }
 0x200   :  { %141 = vst.msk [vmem:[#allocation3] sm:$0xff] %vm56_vm2, %v139_v55 }
 0x205   :  { %v103_v56 = vpop.xlane.xlu1 %102 }
 0x206   :  { %v104_v57 = vrot.slane %v103_v56, 4 }
 0x207   :  { %v177_v58 = vld [vmem:[#allocation3] sm:$0xff] }
 0x208   :  { %v105_v60 = vadd.f32 %v104_v57, %v103_v56  ;;  %279 = vlog2.f32 %v177_v58 }
 0x209   :  { %281 = vlog2.f32 %v200_v59 }
 0x20a   :  { %v106_v61 = vrot.slane %v105_v60, 2  ;;  %283 = vrcp.f32 %v356_v29 }
 0x20c   :  { %v107_v62 = vadd.f32 %v106_v61, %v105_v60 }
 0x20e   :  { %v280_v63 = vpop.eup %279  ;;  %v108_v0 = vrot.slane %v107_v62, 1 }
 0x20f   :  { %v179_v1 = vmul.f32 0.6931472, %v280_v63  ;;  %v282_v2 = vpop.eup %281 }
 0x210   :  { %v109_v3 = vadd.f32 %v108_v0, %v107_v62  ;;  %v202_v7 = vmul.f32 0.6931472, %v282_v2  ;;  %v284_v30 = vpop.eup %283 }
 0x211   :  { %v180_v6 = vadd.f32 %v179_v1, %v176_v5  ;;  %v225_v34 = vmul.f32 16.0, %v284_v30  ;;  %vm229_vm6 = vweird.f32 %v284_v30 }
 0x212   :  { %253 = vpush %v109_v3  ;;  %v203_v9 = vadd.f32 %v202_v7, %v199_v8 }
 0x213   :  { %v182_v4 = vsel %vm56_vm2, %v180_v6, 0.0  ;;  %v226_v35 = vsub.f32 1.0, %v225_v34 }
 0x214   :  { %183 = vadd.xlane.f32.xlu2 %v182_v4  ;;  %v205_v10 = vsel %vm62_vm1, %v203_v9, 0.0 }
 0x215   :  { %v227_v39 = vmul.f32 %v284_v30, %v226_v35 }
 0x217   :  { %v228_v40 = vadd.f32 %v284_v30, %v227_v39 }
 0x219   :  { %v230_v41 = vsel %vm229_vm6, %v284_v30, %v228_v40 }
 0x21c   :  { %206 = vadd.xlane.f32.xlu2 %v205_v10 }
 0x243   :  { %s254_s0 = spop %253 }
 0x244   :  { %v111_v11 = vstv %s254_s0 }
 0x245   :  { %v113_v13 = vmul.f32 -2.0, %v111_v11 }
 0x247   :  { %v114_v14 = vadd.f32 %v113_v13, %v112_v12 }
 0x249   :  { %116 = vst.msk [vmem:[#allocation6] sm:$0x1] %vm51_vm5, %v114_v14 }
 0x250   :  { %v181_v31 = vld [vmem:[#allocation6] sm:$0x1] }
 0x287   :  { %v184_v15 = vpop.xlane.xlu2 %183 }
 0x288   :  { %v185_v16 = vrot.slane %v184_v15, 4 }
 0x28a   :  { %v186_v17 = vadd.f32 %v185_v16, %v184_v15 }
 0x28c   :  { %v187_v18 = vrot.slane %v186_v17, 2 }
 0x28e   :  { %v188_v19 = vadd.f32 %v187_v18, %v186_v17 }
 0x28f   :  { %v207_v20 = vpop.xlane.xlu2 %206 }
 0x290   :  { %v208_v21 = vrot.slane %v207_v20, 4  ;;  %v189_v22 = vrot.slane %v188_v19, 1 }
 0x292   :  { %v209_v23 = vadd.f32 %v208_v21, %v207_v20  ;;  %v190_v24 = vadd.f32 %v189_v22, %v188_v19 }
 0x294   :  { %v210_v25 = vrot.slane %v209_v23, 2  ;;  %255 = vpush %v190_v24 }
 0x296   :  { %v211_v26 = vadd.f32 %v210_v25, %v209_v23 }
 0x298   :  { %v212_v27 = vrot.slane %v211_v26, 1 }
 0x29a   :  { %v213_v28 = vadd.f32 %v212_v27, %v211_v26 }
 0x29c   :  { %257 = vpush %v213_v28 }
 0x2c5   :  { %s256_s22 = spop %255 }
 0x2c6   :  { %v192_v32 = vstv %s256_s22 }
 0x2c7   :  { %v193_v33 = vadd.f32 %v192_v32, %v181_v31 }
 0x2c9   :  { %195 = vst.msk [vmem:[#allocation6] sm:$0x1] %vm51_vm5, %v193_v33 }
 0x2cd   :  { %s258_s23 = spop %257 }
 0x2ce   :  { %v215_v37 = vstv %s258_s23 }
 0x2d0   :  { %v204_v36 = vld [vmem:[#allocation6] sm:$0x1] }
 0x2d1   :  { %v216_v38 = vadd.f32 %v215_v37, %v204_v36 }
 0x2d3   :  { %218 = vst.msk [vmem:[#allocation6] sm:$0x1] %vm51_vm5, %v216_v38 }
 0x2da   :  { %v221_v42 = vld [vmem:[#allocation6] sm:$0x1] }
 0x2db   :  { %259 = vpush %v221_v42 }
 0x2dc   :  { %261 = vpush %v230_v41 }
 0x30c   :  { %s260_s27 = spop %259 }
 0x30d   :  { %s262_s28 = spop %261 }
 0x30e   :  { %s232_s29 = smul.f32 %s262_s28, %s260_s27 }
 0x310   :  { %234 = sst [smem:[#allocation13]] %s232_s29 }
 0x311   :  { %243 = dma.smem_to_hbm %s357_s30, 16, %s241_s26, [#allocation10]  }
 0x312   :  { %349 = dma.done.wait [#allocation10], 16  }
 0x313   :  { %350 = vsyncadd [#allocation10], 4294967280 }
 0x314   :  { %248 = sfence }
 0x315   :  { %249 = vsyncpa [#allocation9], 1 }
 0x316   :  { %250 = vsyncpa [#allocation12], 1 }
 0x317   :  { %251 = vsyncpa [#allocation10], 1 }

</bundles_post_ra>
